<compile_context>
chip_gen: v5e
topology: v5e:2x2
jax: 0.10.0
libtpu: 0.0.40
codegen_flags: <defaults>
</compile_context>

<pallas_src>
import functools
import math

import jax
import jax.numpy as jnp
from jax import lax
from jax.experimental import pallas as pl
from jax.experimental.pallas import tpu as pltpu


def _round_up(x, m):
    return -(-x // m) * m


# ----------------------------------------------------------------------------
# Kernel
# ----------------------------------------------------------------------------
def _policy_kernel(state_ref, w1_ref, b1_ref, w2_ref, b2_ref, wh_ref, bh_ref,
                   out_ref, *, action_dim, min_low, max_high):
    # bf16 MXU operands, f32 accumulation, f32 VPU/EUP epilogue.
    x = state_ref[...].astype(jnp.bfloat16)                          # [TB, S]

    # fc1 + relu
    h1 = jnp.dot(x, w1_ref[...], preferred_element_type=jnp.float32)
    h1 = jnp.maximum(h1 + b1_ref[...], 0.0)                          # [TB, Hp]

    # fc2 + relu
    h2 = jnp.dot(h1.astype(jnp.bfloat16), w2_ref[...],
                 preferred_element_type=jnp.float32)
    h2 = jnp.maximum(h2 + b2_ref[...], 0.0)                          # [TB, Hp]

    # fused (mean || std || zero-pad) heads: one lane-dense [TB, NH] matmul
    heads = jnp.dot(h2.astype(jnp.bfloat16), wh_ref[...],
                    preferred_element_type=jnp.float32)
    heads = heads + bh_ref[...]                                      # [TB, NH]

    # mean path: clamp(.., min_low, max_high)
    mean_part = jnp.clip(heads, min_low, max_high)
    # std path: numerically stable single-exp softplus, then clamp(1e-6, 1)
    sp = jnp.maximum(heads, 0.0) + jnp.log1p(jnp.exp(-jnp.abs(heads)))
    std_part = jnp.clip(sp, 1e-6, 1.0)

    # cols [0, A) -> mean head; cols [A, NH) -> stddev head (cols >= 2A are
    # zero-padding lanes, sliced off in the wrapper).
    col = lax.broadcasted_iota(jnp.int32, heads.shape, 1)
    out_ref[...] = jnp.where(col < action_dim, mean_part, std_part)


# ----------------------------------------------------------------------------
# Wrapper
# ----------------------------------------------------------------------------
def policy_forward(state, params, *, min_low, max_high, batch_tile=512):
    """state: [B, state_dim] (f32 or bf16).  Returns (mean, stddev), each
    [B, action_dim] f32."""
    w1, b1, w2, b2, wm, bm, ws, bs = params
    B, S = state.shape
    H = w1.shape[1]
    A = wm.shape[1]

    # ---- weight prep (tiny one-time ops; never touches `state`) ------------
    # Pad hidden dim and fused-head width to lane-dense multiples of 128 so
    # MXU outputs / kernel output use full vregs and unmasked stores.
    Hp = _round_up(H, 128)
    NH = max(128, _round_up(2 * A, 128))

    wh = jnp.concatenate([wm, ws], axis=1)                               # [H, 2A]
    bh = jnp.concatenate([bm, bs], axis=1)                               # [1, 2A]

    w1p = jnp.pad(w1, ((0, 0), (0, Hp - H))).astype(jnp.bfloat16)        # [S, Hp]
    b1p = jnp.pad(b1, ((0, 0), (0, Hp - H)))                             # [1, Hp]
    w2p = jnp.pad(w2, ((0, Hp - H), (0, Hp - H))).astype(jnp.bfloat16)   # [Hp, Hp]
    b2p = jnp.pad(b2, ((0, 0), (0, Hp - H)))                             # [1, Hp]
    whp = jnp.pad(wh, ((0, Hp - H), (0, NH - 2 * A))).astype(jnp.bfloat16)  # [Hp, NH]
    bhp = jnp.pad(bh, ((0, 0), (0, NH - 2 * A)))                         # [1, NH]

    # ---- generation-aware VMEM budget & batch tile --------------------------
    try:
        vmem_cap = int(pltpu.get_tpu_info().vmem_capacity_bytes)
    except Exception:
        vmem_cap = 64 << 20            # conservative: v7x per-core VMEM
    usable = int(vmem_cap * 0.75)

    state_isz = jnp.dtype(state.dtype).itemsize

    # Weights/biases are single-buffered (pl.Buffered(1), constant index_map).
    resident_bytes = ((w1p.size + w2p.size + whp.size) * 2
                      + (b1p.size + b2p.size + bhp.size) * 4)

    def tile_bytes(tb):
        return (2 * tb * S * state_isz        # streamed state tile, 2 buffers
                + 2 * tb * NH * 4             # streamed out tile,   2 buffers
                + 2 * tb * Hp * (4 + 2)       # h1/h2 in f32 + bf16 copies
                + tb * NH * 4)                # fused-head accumulator

    if B > batch_tile:
        TB = batch_tile
    else:
        # >=2 tiles when possible (keeps both v7x TensorCores busy), 16-row
        # floor (bf16 sublane packing), never larger than the 8-rounded batch.
        TB = min(max(16, _round_up(-(-B // 2), 16)), _round_up(B, 8))
    while TB > 16 and resident_bytes + tile_bytes(TB) > usable:
        TB = max(16, TB // 2)

    grid_b = pl.cdiv(B, TB)   # ragged last tile handled by Pallas masking

    vmem_limit = int(min(max(resident_bytes + tile_bytes(TB) + (2 << 20),
                             16 << 20), usable))

    kernel = functools.partial(
        _policy_kernel, action_dim=A,
        min_low=float(min_low), max_high=float(max_high))

    # Weights/biases: constant index_map, VMEM-resident, single-buffered.
    def resident(arr):
        nd = arr.ndim
        return pl.BlockSpec(arr.shape, lambda i, _nd=nd: (0,) * _nd,
                            pipeline_mode=pl.Buffered(1))

    out = pl.pallas_call(
        kernel,
        out_shape=jax.ShapeDtypeStruct((B, NH), jnp.float32),
        grid=(grid_b,),
        in_specs=[pl.BlockSpec((TB, S), lambda i: (i, 0)),
                  resident(w1p), resident(b1p),
                  resident(w2p), resident(b2p),
                  resident(whp), resident(bhp)],
        out_specs=pl.BlockSpec((TB, NH), lambda i: (i, 0)),
        compiler_params=pltpu.CompilerParams(
            dimension_semantics=("parallel",),
            vmem_limit_bytes=vmem_limit),
    )(state, w1p, b1p, w2p, b2p, whp, bhp)

    mean = out[:, :A]
    std = out[:, A:2 * A]
    return mean, std


# ----------------------------------------------------------------------------
# Deterministic parameter init (xavier_uniform for weights, zeros for biases)
# ----------------------------------------------------------------------------
def xavier_uniform(key, fan_in, fan_out):
    # matches torch.nn.init.xavier_uniform_ with gain=1; stored as [in, out]
    limit = math.sqrt(6.0 / (fan_in + fan_out))
    return jax.random.uniform(key, (fan_in, fan_out), jnp.float32, -limit, limit)


def init_policy_params(key, state_dim, action_dim, hidden_dim):
    k1, k2, k3, k4 = jax.random.split(key, 4)
    w1 = xavier_uniform(k1, state_dim, hidden_dim)
    b1 = jnp.zeros((1, hidden_dim), jnp.float32)
    w2 = xavier_uniform(k2, hidden_dim, hidden_dim)
    b2 = jnp.zeros((1, hidden_dim), jnp.float32)
    wm = xavier_uniform(k3, hidden_dim, action_dim)
    bm = jnp.zeros((1, action_dim), jnp.float32)
    ws = xavier_uniform(k4, hidden_dim, action_dim)
    bs = jnp.zeros((1, action_dim), jnp.float32)
    return (w1, b1, w2, b2, wm, bm, ws, bs)


# Pure-JAX references for sanity checking.
def policy_forward_ref_f32(state, params, *, min_low, max_high):
    w1, b1, w2, b2, wm, bm, ws, bs = params
    h1 = jax.nn.relu(state @ w1 + b1)
    h2 = jax.nn.relu(h1 @ w2 + b2)
    mean = jnp.clip(h2 @ wm + bm, min_low, max_high)
    std = jnp.clip(jax.nn.softplus(h2 @ ws + bs), 1e-6, 1.0)
    return mean, std


def policy_forward_ref_bf16(state, params, *, min_low, max_high):
    # Mirrors the kernel's bf16-matmul / f32-accumulate arithmetic
    # (zero padding of the feature dims is numerically exact, so the
    # unpadded reference matches).
    w1, b1, w2, b2, wm, bm, ws, bs = params
    mm = lambda x, w: jnp.dot(x.astype(jnp.bfloat16), w.astype(jnp.bfloat16),
                              preferred_element_type=jnp.float32)
    h1 = jnp.maximum(mm(state, w1) + b1, 0.0)
    h2 = jnp.maximum(mm(h1, w2) + b2, 0.0)
    mean = jnp.clip(mm(h2, wm) + bm, min_low, max_high)
    std = jnp.clip(jax.nn.softplus(mm(h2, ws) + bs), 1e-6, 1.0)
    return mean, std


# ----------------------------------------------------------------------------
if __name__ == "__main__":
    # synthetic Box action space: low = -1, high = +1 for every action dim
    state_dim, action_dim, hidden_dim = 16, 4, 32
    batch = 8
    action_low, action_high = -1.0, 1.0        # -> min_low=-1, max_high=1

    key = jax.random.PRNGKey(0)
    pkey, skey = jax.random.split(key)

    params = init_policy_params(pkey, state_dim, action_dim, hidden_dim)
    state = jax.random.normal(skey, (batch, state_dim), jnp.float32)

    mean, std = policy_forward(state, params,
                               min_low=action_low, max_high=action_high)
    jax.block_until_ready((mean, std))

    mean_bf, std_bf = policy_forward_ref_bf16(state, params,
                                              min_low=action_low,
                                              max_high=action_high)
    mean_f32, std_f32 = policy_forward_ref_f32(state, params,
                                               min_low=action_low,
                                               max_high=action_high)

    assert mean.shape == (batch, action_dim) and std.shape == (batch, action_dim)
    # Tight check against an arithmetic-matched (bf16 MXU) reference.
    assert jnp.allclose(mean, mean_bf, atol=1e-4, rtol=1e-4)
    assert jnp.allclose(std, std_bf, atol=1e-4, rtol=1e-4)
    # Loose check against the full-f32 reference (bf16 matmul rounding).
    assert jnp.allclose(mean, mean_f32, atol=5e-2, rtol=5e-2)
    assert jnp.allclose(std, std_f32, atol=5e-2, rtol=5e-2)
    # TODO(synk): `sample()` uses Normal.rsample (host RNG); only forward() is kernelized.

    print("KERNEL_OK")
</pallas_src>

<mosaic_0001>
module attributes {stable_mosaic.version = 11 : i64} {
  func.func @_policy_kernel(%arg0: i32, %arg1: memref<8x16xf32, #tpu.memory_space<vmem>>, %arg2: memref<16x128xbf16, #tpu.memory_space<vmem>>, %arg3: memref<1x128xf32, #tpu.memory_space<vmem>>, %arg4: memref<128x128xbf16, #tpu.memory_space<vmem>>, %arg5: memref<1x128xf32, #tpu.memory_space<vmem>>, %arg6: memref<128x128xbf16, #tpu.memory_space<vmem>>, %arg7: memref<1x128xf32, #tpu.memory_space<vmem>>, %arg8: memref<8x128xf32, #tpu.memory_space<vmem>>) attributes {dimension_semantics = [#tpu.dimension_semantics<parallel>], iteration_bounds = array<i64: 1>, scalar_prefetch = 0 : i64, scratch_operands = 0 : i64, tpu.core_type = #tpu.core_type<tc>, window_params = [{transform_indices = @transform_0, window_bounds = array<i64: 8, 16>}, {pipeline_mode = #tpu.pipeline_mode<synchronous>, transform_indices = @transform_1, window_bounds = array<i64: 16, 128>}, {pipeline_mode = #tpu.pipeline_mode<synchronous>, transform_indices = @transform_2, window_bounds = array<i64: 1, 128>}, {pipeline_mode = #tpu.pipeline_mode<synchronous>, transform_indices = @transform_3, window_bounds = array<i64: 128, 128>}, {pipeline_mode = #tpu.pipeline_mode<synchronous>, transform_indices = @transform_4, window_bounds = array<i64: 1, 128>}, {pipeline_mode = #tpu.pipeline_mode<synchronous>, transform_indices = @transform_5, window_bounds = array<i64: 128, 128>}, {pipeline_mode = #tpu.pipeline_mode<synchronous>, transform_indices = @transform_6, window_bounds = array<i64: 1, 128>}, {transform_indices = @transform_7, window_bounds = array<i64: 8, 128>}]} {
    %c0 = arith.constant 0 : index
    %c0_0 = arith.constant 0 : index
    %0 = vector.load %arg1[%c0, %c0_0] : memref<8x16xf32, #tpu.memory_space<vmem>>, vector<8x16xf32>
    %1 = arith.truncf %0 : vector<8x16xf32> to vector<8x16xbf16>
    %c0_1 = arith.constant 0 : index
    %c0_2 = arith.constant 0 : index
    %2 = vector.load %arg2[%c0_1, %c0_2] : memref<16x128xbf16, #tpu.memory_space<vmem>>, vector<16x128xbf16>
    %cst = arith.constant dense<0.000000e+00> : vector<8x128xf32>
    %3 = tpu.matmul %1, %2, %cst {dimension_numbers = #tpu.dot_dimension_numbers<[1], [0], [0], [1], [0, 0, 1, 1], [], []>} : vector<8x16xbf16>, vector<16x128xbf16>, vector<8x128xf32> -> vector<8x128xf32>
    %c0_3 = arith.constant 0 : index
    %c0_4 = arith.constant 0 : index
    %4 = vector.load %arg3[%c0_3, %c0_4] : memref<1x128xf32, #tpu.memory_space<vmem>>, vector<1x128xf32>
    %5 = vector.broadcast %4 : vector<1x128xf32> to vector<8x128xf32>
    %6 = arith.addf %3, %5 : vector<8x128xf32>
    %cst_5 = arith.constant 0.000000e+00 : f32
    %7 = vector.broadcast %cst_5 : f32 to vector<8x128xf32>
    %8 = arith.maximumf %6, %7 : vector<8x128xf32>
    %9 = arith.truncf %8 : vector<8x128xf32> to vector<8x128xbf16>
    %c0_6 = arith.constant 0 : index
    %c0_7 = arith.constant 0 : index
    %10 = vector.load %arg4[%c0_6, %c0_7] : memref<128x128xbf16, #tpu.memory_space<vmem>>, vector<128x128xbf16>
    %cst_8 = arith.constant dense<0.000000e+00> : vector<8x128xf32>
    %11 = tpu.matmul %9, %10, %cst_8 {dimension_numbers = #tpu.dot_dimension_numbers<[1], [0], [0], [1], [0, 0, 1, 1], [], []>} : vector<8x128xbf16>, vector<128x128xbf16>, vector<8x128xf32> -> vector<8x128xf32>
    %c0_9 = arith.constant 0 : index
    %c0_10 = arith.constant 0 : index
    %12 = vector.load %arg5[%c0_9, %c0_10] : memref<1x128xf32, #tpu.memory_space<vmem>>, vector<1x128xf32>
    %13 = vector.broadcast %12 : vector<1x128xf32> to vector<8x128xf32>
    %14 = arith.addf %11, %13 : vector<8x128xf32>
    %cst_11 = arith.constant 0.000000e+00 : f32
    %15 = vector.broadcast %cst_11 : f32 to vector<8x128xf32>
    %16 = arith.maximumf %14, %15 : vector<8x128xf32>
    %17 = arith.truncf %16 : vector<8x128xf32> to vector<8x128xbf16>
    %c0_12 = arith.constant 0 : index
    %c0_13 = arith.constant 0 : index
    %18 = vector.load %arg6[%c0_12, %c0_13] : memref<128x128xbf16, #tpu.memory_space<vmem>>, vector<128x128xbf16>
    %cst_14 = arith.constant dense<0.000000e+00> : vector<8x128xf32>
    %19 = tpu.matmul %17, %18, %cst_14 {dimension_numbers = #tpu.dot_dimension_numbers<[1], [0], [0], [1], [0, 0, 1, 1], [], []>} : vector<8x128xbf16>, vector<128x128xbf16>, vector<8x128xf32> -> vector<8x128xf32>
    %c0_15 = arith.constant 0 : index
    %c0_16 = arith.constant 0 : index
    %20 = vector.load %arg7[%c0_15, %c0_16] : memref<1x128xf32, #tpu.memory_space<vmem>>, vector<1x128xf32>
    %21 = vector.broadcast %20 : vector<1x128xf32> to vector<8x128xf32>
    %22 = arith.addf %19, %21 : vector<8x128xf32>
    %cst_17 = arith.constant -1.000000e+00 : f32
    %cst_18 = arith.constant 1.000000e+00 : f32
    %23 = vector.broadcast %cst_17 : f32 to vector<8x128xf32>
    %24 = arith.maximumf %23, %22 : vector<8x128xf32>
    %25 = vector.broadcast %cst_18 : f32 to vector<8x128xf32>
    %26 = arith.minimumf %25, %24 : vector<8x128xf32>
    %cst_19 = arith.constant 0.000000e+00 : f32
    %27 = vector.broadcast %cst_19 : f32 to vector<8x128xf32>
    %28 = arith.maximumf %22, %27 : vector<8x128xf32>
    %29 = math.absf %22 : vector<8x128xf32>
    %cst_20 = arith.constant 0.000000e+00 : f32
    %30 = vector.broadcast %cst_20 : f32 to vector<8x128xf32>
    %31 = arith.subf %30, %29 : vector<8x128xf32>
    %32 = math.exp %31 : vector<8x128xf32>
    %33 = math.log1p %32 : vector<8x128xf32>
    %34 = arith.addf %28, %33 : vector<8x128xf32>
    %cst_21 = arith.constant 9.99999997E-7 : f32
    %cst_22 = arith.constant 1.000000e+00 : f32
    %35 = vector.broadcast %cst_21 : f32 to vector<8x128xf32>
    %36 = arith.maximumf %35, %34 : vector<8x128xf32>
    %37 = vector.broadcast %cst_22 : f32 to vector<8x128xf32>
    %38 = arith.minimumf %37, %36 : vector<8x128xf32>
    %39 = tpu.iota {dimensions = array<i32: 1>} : vector<8x128xi32>
    %c4_i32 = arith.constant 4 : i32
    %40 = vector.broadcast %c4_i32 : i32 to vector<8x128xi32>
    %41 = arith.cmpi slt, %39, %40 : vector<8x128xi32>
    %42 = arith.select %41, %26, %38 : vector<8x128xi1>, vector<8x128xf32>
    %c0_23 = arith.constant 0 : index
    %c0_24 = arith.constant 0 : index
    %43 = vector.load %arg8[%c0_23, %c0_24] : memref<8x128xf32, #tpu.memory_space<vmem>>, vector<8x128xf32>
    tpu.vector_store %arg8[%c0_23, %c0_24], %42 {strides = array<i32>} : memref<8x128xf32, #tpu.memory_space<vmem>>, vector<8x128xf32>,
    return
  }
  func.func @transform_0(%arg0: i32) -> (i32, i32) {
    %c0_i32 = arith.constant 0 : i32
    %c0_i32_0 = arith.constant 0 : i32
    return %arg0, %c0_i32 : i32, i32
  }
  func.func @transform_1(%arg0: i32) -> (i32, i32) {
    %c0_i32 = arith.constant 0 : i32
    %c0_i32_0 = arith.constant 0 : i32
    %c0_i32_1 = arith.constant 0 : i32
    return %c0_i32, %c0_i32_0 : i32, i32
  }
  func.func @transform_2(%arg0: i32) -> (i32, i32) {
    %c0_i32 = arith.constant 0 : i32
    %c0_i32_0 = arith.constant 0 : i32
    %c0_i32_1 = arith.constant 0 : i32
    return %c0_i32, %c0_i32_0 : i32, i32
  }
  func.func @transform_3(%arg0: i32) -> (i32, i32) {
    %c0_i32 = arith.constant 0 : i32
    %c0_i32_0 = arith.constant 0 : i32
    %c0_i32_1 = arith.constant 0 : i32
    return %c0_i32, %c0_i32_0 : i32, i32
  }
  func.func @transform_4(%arg0: i32) -> (i32, i32) {
    %c0_i32 = arith.constant 0 : i32
    %c0_i32_0 = arith.constant 0 : i32
    %c0_i32_1 = arith.constant 0 : i32
    return %c0_i32, %c0_i32_0 : i32, i32
  }
  func.func @transform_5(%arg0: i32) -> (i32, i32) {
    %c0_i32 = arith.constant 0 : i32
    %c0_i32_0 = arith.constant 0 : i32
    %c0_i32_1 = arith.constant 0 : i32
    return %c0_i32, %c0_i32_0 : i32, i32
  }
  func.func @transform_6(%arg0: i32) -> (i32, i32) {
    %c0_i32 = arith.constant 0 : i32
    %c0_i32_0 = arith.constant 0 : i32
    %c0_i32_1 = arith.constant 0 : i32
    return %c0_i32, %c0_i32_0 : i32, i32
  }
  func.func @transform_7(%arg0: i32) -> (i32, i32) {
    %c0_i32 = arith.constant 0 : i32
    %c0_i32_0 = arith.constant 0 : i32
    return %arg0, %c0_i32 : i32, i32
  }
}

</mosaic_0001>

<bundles_post_ra>
// kernel: tpu_custom_call.1
= control target key start
LH: loop header
LB: loop body
LE: loop exit
PB: predicated region body
PF: predicated region fallthrough
CT: control target
= control target key end

     0   :  { %12 = vsyncpa [#allocation3], 0  ;;  %s629_s0 = inlined_call_operand.hbm [shape: f32[8,16], index: 0, kind: input, shape index: {}]   ;;  %s630_s1 = inlined_call_operand.hbm [shape: bf16[16,128], index: 1, kind: input, shape index: {}]   ;;  %s631_s2 = inlined_call_operand.vmem [shape: f32[1,128], index: 2, kind: input, shape index: {}]   ;;  %s632_s3 = inlined_call_operand.hbm [shape: bf16[128,128], index: 3, kind: input, shape index: {}]   ;;  %s633_s4 = inlined_call_operand.vmem [shape: f32[1,128], index: 4, kind: input, shape index: {}]   ;;  %s634_s5 = inlined_call_operand.hbm [shape: bf16[128,128], index: 5, kind: input, shape index: {}]   ;;  %s635_s6 = inlined_call_operand.vmem [shape: f32[1,128], index: 6, kind: input, shape index: {}]   ;;  %s636_s7 = inlined_call_operand.hbm [shape: f32[8,128], index: 7, kind: output, shape index: {}]  }
   0x1   :  { %13 = vsyncpa [#allocation6], 0 }
   0x2   :  { %14 = vsyncpa [#allocation9], 0  ;;  %s31_s26 = sshll.u32 %s630_s1, 4  ;;  %s32_s26 = int_to_ptr.hbm [resolvable:$true] %s31_s26 }
   0x3   :  { %15 = vsyncpa [#allocation4], 0  ;;  %s558_s27 = smov [#allocation5]   ;;  %s21_s8 = sshll.u32 %s629_s0, 4  ;;  %s22_s8 = int_to_ptr.hbm [resolvable:$true] %s21_s8 }
   0x4   :  { %s33_s28 = sshll.u32 %s558_s27, 4  ;;  %s559_s9 = smov 64   ;;  %s34_s28 = int_to_ptr.vmem [resolvable:$true] %s33_s28 }
   0x5   :  { %s560_s10 = smov 4   ;;  %s561_s11 = smov [#allocation2]  }
   0x6   :  { %39 = dma.hbm_to_vmem [thread:$0]  %s32_s26, 128, %s34_s28, [#allocation6], %s559_s9, %s559_s9, %s560_s10  }
   0x7   :  { %s23_s12 = sshll.u32 %s561_s11, 4  ;;  %s46_s15 = sshll.u32 %s632_s3, 4  ;;  %s24_s12 = int_to_ptr.vmem [resolvable:$true] %s23_s12  ;;  %s47_s15 = int_to_ptr.hbm [resolvable:$true] %s46_s15 }
   0x8   :  { %26 = dma.hbm_to_vmem [thread:$0]  %s22_s8, 128, %s24_s12, [#allocation3]  }
   0x9   :  { %s61_s17 = sshll.u32 %s634_s5, 4  ;;  %s562_s18 = smov [#allocation7]   ;;  %s62_s17 = int_to_ptr.hbm [resolvable:$true] %s61_s17 }
   0xa   :  { %s48_s19 = sshll.u32 %s562_s18, 4  ;;  %s563_s0 = smov [#allocation8]   ;;  %s49_s19 = int_to_ptr.vmem [resolvable:$true] %s48_s19 }
   0xb   :  { %54 = dma.hbm_to_vmem [thread:$0]  %s47_s15, 1024, %s49_s19, [#allocation6], %s559_s9, %s559_s9, %s560_s10  }
   0xc   :  { %s63_s20 = sshll.u32 %s563_s0, 4  ;;  %s64_s20 = int_to_ptr.vmem [resolvable:$true] %s63_s20 }
   0xd   :  { %69 = dma.hbm_to_vmem [thread:$0]  %s62_s17, 1024, %s64_s20, [#allocation9], %s559_s9, %s559_s9, %s560_s10  }
   0xe   :  { %550 = dma.done.wait [#allocation3], 128  }
   0xf   :  { %551 = vsyncadd [#allocation3], 4294967168 }
  0x10   :  { %552 = dma.done.wait [#allocation6], 1152  }
  0x11   :  { %553 = vsyncadd [#allocation6], 4294966144 }
  0x12   :  { %554 = dma.done.wait [#allocation9], 1024  }
  0x13   :  { %555 = vsyncadd [#allocation9], 4294966272  ;;  %v399_v0 = vld [vmem:[#allocation5] sm:$0xff]  ;;  %v89_v1 = vld [vmem:[#allocation2] sm:$0xff]  ;;  %vm103_vm0 = vcmask 130048   ;;  %v305_v43 = vlaneseq  ;;  %s317_s26 = sshll.u32 %s636_s7, 4  ;;  %s318_s26 = int_to_ptr.hbm [resolvable:$true] %s317_s26 }
  0x14   :  { %v407_v2 = vld [vmem:[#allocation7 + $0x38] sm:$0xff]  ;;  %v90_v3 = vpack.c.bf16 %v89_v1, %v89_v1  ;;  %114 = vmatpush.bf16.msra.mxu0 %v399_v0  ;;  %v406_v4 = vld [vmem:[#allocation7 + $0x30] sm:$0xff]  ;;  %v405_v5 = vld [vmem:[#allocation7 + $0x28] sm:$0xff] }
  0x15   :  { %190 = vmatpush.bf16.msra.mxu1 %v407_v2  ;;  %v404_v6 = vld [vmem:[#allocation7 + $0x20] sm:$0xff]  ;;  %v403_v7 = vld [vmem:[#allocation7 + $0x18] sm:$0xff]  ;;  %v402_v8 = vld [vmem:[#allocation7 + $0x10] sm:$0xff]  ;;  %v306_v49 = vand.u32 127, %v305_v43 }
  0x16   :  { %v401_v9 = vld [vmem:[#allocation7 + $0x8] sm:$0xff]  ;;  %v400_v10 = vld [vmem:[#allocation7] sm:$0xff]  ;;  %v415_v11 = vld [vmem:[#allocation8 + $0x38] sm:$0xff] }
  0x17   :  { %333 = vmatmul.msk.bf16.vlgmr.msra.gmra.mxu0 %vm103_vm0, %v90_v3  ;;  %273 = vmatpush.bf16.msra.mxu2 %v415_v11  ;;  %v414_v12 = vld [vmem:[#allocation8 + $0x30] sm:$0xff]  ;;  %v413_v13 = vld [vmem:[#allocation8 + $0x28] sm:$0xff]  ;;  %v412_v14 = vld [vmem:[#allocation8 + $0x20] sm:$0xff]  ;;  %vm307_vm2 = vcmp.lt.s32.totalorder %v306_v49, 4 }
  0x18   :  { %v411_v15 = vld [vmem:[#allocation8 + $0x18] sm:$0xff]  ;;  %v410_v16 = vld [vmem:[#allocation8 + $0x10] sm:$0xff]  ;;  %v409_v23 = vld [vmem:[#allocation8 + $0x8] sm:$0xff] }
  0x19   :  { %191 = vmatpush.bf16.msra.mxu1 %v406_v4  ;;  %v423_v17 = vld [vmem:[%s631_s2] ss:$0 sm:$0xff]  ;;  %v408_v24 = vld [vmem:[#allocation8] sm:$0xff] }
  0x1a   :  { %v424_v25 = vld [vmem:[%s633_s4] ss:$0 sm:$0xff]  ;;  %s564_s4 = smov [#allocation10]  }
  0x1b   :  { %274 = vmatpush.bf16.msra.mxu2 %v414_v12  ;;  %v425_v31 = vld [vmem:[%s635_s6] ss:$0 sm:$0xff]  ;;  %s315_s6 = sshll.u32 %s564_s4, 4  ;;  %s316_s6 = int_to_ptr.vmem [resolvable:$true] %s315_s6 }
  0x1d   :  { %192 = vmatpush.bf16.msra.mxu1 %v405_v5 }
  0x1f   :  { %275 = vmatpush.bf16.msra.mxu2 %v413_v13 }
  0x21   :  { %193 = vmatpush.bf16.msra.mxu1 %v404_v6 }
  0x23   :  { %276 = vmatpush.bf16.msra.mxu2 %v412_v14 }
  0x25   :  { %194 = vmatpush.bf16.msra.mxu1 %v403_v7 }
  0x27   :  { %277 = vmatpush.bf16.msra.mxu2 %v411_v15 }
  0x29   :  { %195 = vmatpush.bf16.msra.mxu1 %v402_v8 }
  0x2b   :  { %278 = vmatpush.bf16.msra.mxu2 %v410_v16 }
  0x2d   :  { %196 = vmatpush.bf16.msra.mxu1 %v401_v9 }
  0x2f   :  { %279 = vmatpush.bf16.msra.mxu2 %v409_v23 }
  0x31   :  { %197 = vmatpush.bf16.msra.mxu1 %v400_v10 }
  0x33   :  { %280 = vmatpush.bf16.msra.mxu2 %v408_v24 }
  0x94   :  { %v116_v18 = vpop.f32.mrf.mxu0 }
  0x95   :  { %v117_v19 = vadd.f32 %v423_v17, %v116_v18 }
  0x97   :  { %v120_v20 = vmax.f32 %v117_v19, 0.0 }
  0x99   :  { %v121_v21 = vpack.c.bf16 %v120_v20, %v120_v20 }
  0x9b   :  { %198 = vmatmul.bf16.vlgmr.msra.gmra.mxu1 %v121_v21 }
  0x9c   :  { %v118_v22 = vpop.f32.mrf.mxu0 }
 0x118   :  { %v199_v26 = vpop.f32.mrf.mxu1 }
 0x119   :  { %v200_v27 = vadd.f32 %v424_v25, %v199_v26 }
 0x11b   :  { %v203_v28 = vmax.f32 %v200_v27, 0.0 }
 0x11d   :  { %v204_v29 = vpack.c.bf16 %v203_v28, %v203_v28 }
 0x11f   :  { %281 = vmatmul.bf16.vlgmr.msra.gmra.mxu2 %v204_v29 }
 0x120   :  { %v201_v30 = vpop.f32.mrf.mxu1 }
 0x1a2   :  { %v282_v32 = vpop.f32.mrf.mxu2 }
 0x1a3   :  { %v283_v33 = vadd.f32 %v425_v31, %v282_v32 }
 0x1a5   :  { %v289_v34 = vand.u32 2147483647, %v283_v33  ;;  %v288_v47 = vmax.f32 %v283_v33, 0.0  ;;  %v398_v52 = vclamps-f32 %v283_v33, 1.0 }
 0x1a7   :  { %v290_v35 = vsub.f32 0.0, %v289_v34 }
 0x1a9   :  { %v291_v36 = vmul.f32 1.442695, %v290_v35 }
 0x1aa   :  { %v284_v37 = vpop.f32.mrf.mxu2 }
 0x1ab   :  { %426 = vpow2.f32 %v291_v36 }
 0x1b1   :  { %v427_v38 = vpop.eup %426 }
 0x1b2   :  { %v293_v39 = vadd.f32 1.0, %v427_v38  ;;  %v296_v40 = vmul.f32 -0.5, %v427_v38  ;;  %v299_v42 = vand.u32 2147483647, %v427_v38 }
 0x1b4   :  { %428 = vlog2.f32 %v293_v39  ;;  %v297_v41 = vadd.f32 1.0, %v296_v40  ;;  %vm300_vm1 = vcmp.lt.f32.partialorder %v299_v42, 0.0004427343 }
 0x1b6   :  { %v298_v46 = vmul.f32 %v427_v38, %v297_v41 }
 0x1ba   :  { %v429_v44 = vpop.eup %428 }
 0x1bb   :  { %v295_v45 = vmul.f32 0.6931472, %v429_v44 }
 0x1bd   :  { %v301_v48 = vsel %vm300_vm1, %v298_v46, %v295_v45 }
 0x1be   :  { %v302_v50 = vadd.f32 %v301_v48, %v288_v47 }
 0x1c0   :  { %v303_v51 = vmax.f32 %v302_v50, 1e-06 }
 0x1c2   :  { %v304_v53 = vmin.f32 %v303_v51, 1.0 }
 0x1c4   :  { %v308_v54 = vsel %vm307_vm2, %v398_v52, %v304_v53 }
 0x1c5   :  { %309 = vst [vmem:[#allocation10] sm:$0xff] %v308_v54 }
 0x1c6   :  { %320 = dma.vmem_to_hbm [thread:$0]  %s316_s6, 128, %s318_s26, [#allocation4]  }
 0x1c7   :  { %556 = dma.done.wait [#allocation4], 128  }
 0x1c8   :  { %557 = vsyncadd [#allocation4], 4294967168 }
 0x1c9   :  { %325 = vsyncpa [#allocation3], 1 }
 0x1ca   :  { %326 = vsyncpa [#allocation6], 1 }
 0x1cb   :  { %327 = vsyncpa [#allocation9], 1 }
 0x1cc   :  { %328 = vsyncpa [#allocation4], 1 }

</bundles_post_ra>
